<compile_context>
chip_gen: v7x
topology: tpu7x:2x2x1
jax: 0.10.0
libtpu: 0.0.40
codegen_flags: <defaults>
</compile_context>

<pallas_src>
import jax
import jax.numpy as jnp
from jax.experimental import pallas as pl
from jax.experimental.pallas import tpu as pltpu


def _round_up(v, m):
    return ((v + m - 1) // m) * m


def _feat_emb_kernel(x_ref, w1_ref, b1_ref, w2_ref, b2_ref, o_ref):
    # hidden_1: Linear + tanh (MXU dot with f32 accumulation; bias/tanh in f32).
    h = jnp.tanh(
        jnp.dot(x_ref[...], w1_ref[...], preferred_element_type=jnp.float32)
        + b1_ref[...]
    )
    # hidden_2: Linear + tanh.  h is cast back to the streaming dtype so the second
    # dot uses the same (possibly bf16) MXU input path; accumulation stays f32.
    y = jnp.tanh(
        jnp.dot(h.astype(w2_ref.dtype), w2_ref[...],
                preferred_element_type=jnp.float32)
        + b2_ref[...]
    )
    o_ref[...] = y.astype(o_ref.dtype)


def prepare_feat_emb_params(w1, b1, w2, b2, *, fold=None, stream_dtype=None):
    """Build lane-dense (block-diagonal) weights ONCE.

    w1: (n_feats, n_hidden_u), b1: (1, n_hidden_u) or (n_hidden_u,),
    w2: (n_hidden_u, n_hidden_t_enc), b2: (1, n_hidden_t_enc) or (n_hidden_t_enc,).
    stream_dtype: dtype used for x / weights / output streaming (e.g. jnp.bfloat16);
    biases stay f32 so bias+tanh run in f32 inside the kernel.
    """
    n_feats, n_hid = w1.shape
    n_out = w2.shape[1]
    if fold is None:
        fold = 128 // n_out if (n_out < 128 and 128 % n_out == 0) else 1
        # Keep the block-diagonal contraction dims modest.
        while fold > 1 and fold * max(n_feats, n_hid) > 1024:
            fold //= 2
    dt = stream_dtype if stream_dtype is not None else w1.dtype
    eye = jnp.eye(fold, dtype=dt)
    w1f = jnp.kron(eye, w1.astype(dt))                               # (fold*n_feats, fold*n_hid)
    w2f = jnp.kron(eye, w2.astype(dt))                               # (fold*n_hid,  fold*n_out)
    b1f = jnp.tile(jnp.asarray(b1, jnp.float32).reshape(1, -1), (1, fold))
    b2f = jnp.tile(jnp.asarray(b2, jnp.float32).reshape(1, -1), (1, fold))
    return fold, w1f, b1f, w2f, b2f


def feat_emb_net_forward(x, params, *, tile_m=16384):
    """x: (N, n_feats).  params: output of prepare_feat_emb_params()."""
    fold, w1f, b1f, w2f, b2f = params
    n, n_feats = x.shape
    n_hid_f = w1f.shape[1]          # fold * n_hidden_u
    n_out_f = w2f.shape[1]          # fold * n_hidden_t_enc
    n_out = n_out_f // fold
    stream_dtype = w1f.dtype
    itemsize = jnp.dtype(stream_dtype).itemsize

    if x.dtype != stream_dtype:
        x = x.astype(stream_dtype)  # best if the caller already supplies stream_dtype

    # Rare fallback only: a few (< fold) rows of padding so the free row-major fold
    # reshape applies.  Never triggers when N % fold == 0 (the common case), so the
    # whole-array pad/slice copies from the previous version are gone.
    pad = (-n) % fold
    if pad:
        x = jnp.pad(x, ((0, pad), (0, 0)))
    n_pad = n + pad
    n_rows = n_pad // fold

    # Fold: x is row-major, so this reshape is pure layout plumbing (no copy).
    xf = x.reshape(n_rows, fold * n_feats)

    # ---- batch tiling (in folded rows) ------------------------------------------
    row_quant = 8 if itemsize >= 4 else 32 // itemsize    # bf16 sublane packing -> 16
    tile_r = max(row_quant, (max(tile_m, 1) // fold) // row_quant * row_quant)
    # v7x megacore balance: keep >= 4 grid steps when there is enough work so both
    # TensorCores get multiple steps (no-op change on v5e/v6e).
    if n_rows >= 4 * row_quant:
        tile_r = min(tile_r, _round_up(pl.cdiv(n_rows, 4), row_quant))
    if tile_r >= n_rows:
        tile_r = n_rows            # single block covering the full extent
    grid_m = pl.cdiv(n_rows, tile_r)

    # ---- advisory cost + VMEM sizing ---------------------------------------------
    rows_done = grid_m * tile_r
    cost = pl.CostEstimate(
        flops=2 * rows_done * n_hid_f * (fold * n_feats + n_out_f),
        transcendentals=rows_done * (n_hid_f + n_out_f),
        bytes_accessed=itemsize * rows_done * (fold * n_feats + n_out_f)
        + itemsize * (w1f.size + w2f.size) + 4 * (b1f.size + b2f.size),
    )
    vmem_need = (2 * tile_r * (fold * n_feats + n_out_f) * itemsize
                 + 2 * ((w1f.size + w2f.size) * itemsize
                        + (b1f.size + b2f.size) * 4))
    cp_kwargs = dict(dimension_semantics=("parallel",))   # megacore sharding on v7x
    if vmem_need > 12 * (1 << 20):
        # Only needed for very large user-requested tiles (v5e scoped default = 16 MiB).
        cp_kwargs["vmem_limit_bytes"] = int(min(vmem_need * 3 // 2, 56 * (1 << 20)))

    out_folded = pl.pallas_call(
        _feat_emb_kernel,
        out_shape=jax.ShapeDtypeStruct((n_rows, n_out_f), stream_dtype),
        grid=(grid_m,),
        in_specs=[
            pl.BlockSpec((tile_r, fold * n_feats), lambda i: (i, 0)),
            pl.BlockSpec(w1f.shape, lambda i: (0, 0)),   # weights stay VMEM-resident
            pl.BlockSpec(b1f.shape, lambda i: (0, 0)),
            pl.BlockSpec(w2f.shape, lambda i: (0, 0)),
            pl.BlockSpec(b2f.shape, lambda i: (0, 0)),
        ],
        out_specs=pl.BlockSpec((tile_r, n_out_f), lambda i: (i, 0)),
        compiler_params=pltpu.CompilerParams(**cp_kwargs),
        cost_estimate=cost,
    )(xf, w1f, b1f, w2f, b2f)

    # Unfold: byte-identical row-major view; slice only in the rare pad fallback.
    out = out_folded.reshape(n_pad, n_out)
    if pad:
        out = out[:n]
    return out


def init_params(key, n_feats, n_hidden_u, n_hidden_t_enc, dtype=jnp.float32):
    """Deterministic parameter init (PyTorch-Linear-style uniform bounds)."""
    k1, k2, k3, k4 = jax.random.split(key, 4)
    bound1 = 1.0 / (n_feats ** 0.5)
    bound2 = 1.0 / (n_hidden_u ** 0.5)
    # Stored already transposed: (in_dim, out_dim).
    w1 = jax.random.uniform(k1, (n_feats, n_hidden_u), dtype, -bound1, bound1)
    b1 = jax.random.uniform(k2, (1, n_hidden_u), dtype, -bound1, bound1)
    w2 = jax.random.uniform(k3, (n_hidden_u, n_hidden_t_enc), dtype, -bound2, bound2)
    b2 = jax.random.uniform(k4, (1, n_hidden_t_enc), dtype, -bound2, bound2)
    return w1, b1, w2, b2


if __name__ == "__main__":
    # Small shapes consistent with the module: x is (batch, n_feats).
    batch = 8
    n_feats = 16
    n_hidden_u = 32
    n_hidden_t_enc = 32

    key = jax.random.PRNGKey(0)
    kx, kp, kx2 = jax.random.split(key, 3)
    x = jax.random.normal(kx, (batch, n_feats), jnp.float32)
    w1, b1, w2, b2 = init_params(kp, n_feats, n_hidden_u, n_hidden_t_enc)

    def ref_fn(xx):
        return jnp.tanh(jnp.tanh(xx @ w1 + b1) @ w2 + b2)

    # Folded weights are built ONCE (hoisted out of the per-call forward path).
    params_f32 = prepare_feat_emb_params(w1, b1, w2, b2)

    out = jax.block_until_ready(feat_emb_net_forward(x, params_f32))
    ref = ref_fn(x)
    assert out.shape == (batch, n_hidden_t_enc)
    assert jnp.allclose(out, ref, atol=1e-5, rtol=1e-5)

    # Larger case: multi-step grid (megacore-balanced), resident weights, ragged last
    # block handled by Pallas masking — no wrapper-side pad/slice copies.
    x2 = jax.random.normal(kx2, (1000, n_feats), jnp.float32)
    out2 = jax.block_until_ready(feat_emb_net_forward(x2, params_f32))
    ref2 = ref_fn(x2)
    assert out2.shape == (1000, n_hidden_t_enc)
    assert jnp.allclose(out2, ref2, atol=1e-5, rtol=1e-5)

    # Optional bf16 streaming path: halves HBM bytes on this memory-bound kernel
    # (f32 MXU accumulation and f32 bias+tanh are kept; tolerance relaxed accordingly).
    params_bf16 = prepare_feat_emb_params(w1, b1, w2, b2, stream_dtype=jnp.bfloat16)
    out3 = jax.block_until_ready(
        feat_emb_net_forward(x2.astype(jnp.bfloat16), params_bf16)
    )
    assert out3.shape == (1000, n_hidden_t_enc)
    assert out3.dtype == jnp.bfloat16
    assert jnp.allclose(out3.astype(jnp.float32), ref2, atol=2e-2, rtol=2e-2)

    print("KERNEL_OK")
</pallas_src>

<mosaic_0001>
module attributes {stable_mosaic.version = 11 : i64} {
  func.func @_feat_emb_kernel(%arg0: i32, %arg1: memref<2x64xf32, #tpu.memory_space<vmem>>, %arg2: memref<64x128xf32, #tpu.memory_space<vmem>>, %arg3: memref<1x128xf32, #tpu.memory_space<vmem>>, %arg4: memref<128x128xf32, #tpu.memory_space<vmem>>, %arg5: memref<1x128xf32, #tpu.memory_space<vmem>>, %arg6: memref<2x128xf32, #tpu.memory_space<vmem>>) attributes {dimension_semantics = [#tpu.dimension_semantics<parallel>], iteration_bounds = array<i64: 1>, scalar_prefetch = 0 : i64, scratch_operands = 0 : i64, tpu.core_type = #tpu.core_type<tc>, window_params = [{transform_indices = @transform_0, window_bounds = array<i64: 2, 64>}, {pipeline_mode = #tpu.pipeline_mode<synchronous>, transform_indices = @transform_1, window_bounds = array<i64: 64, 128>}, {pipeline_mode = #tpu.pipeline_mode<synchronous>, transform_indices = @transform_2, window_bounds = array<i64: 1, 128>}, {pipeline_mode = #tpu.pipeline_mode<synchronous>, transform_indices = @transform_3, window_bounds = array<i64: 128, 128>}, {pipeline_mode = #tpu.pipeline_mode<synchronous>, transform_indices = @transform_4, window_bounds = array<i64: 1, 128>}, {transform_indices = @transform_5, window_bounds = array<i64: 2, 128>}]} {
    %c0 = arith.constant 0 : index
    %c0_0 = arith.constant 0 : index
    %0 = vector.load %arg1[%c0, %c0_0] : memref<2x64xf32, #tpu.memory_space<vmem>>, vector<2x64xf32>
    %c0_1 = arith.constant 0 : index
    %c0_2 = arith.constant 0 : index
    %1 = vector.load %arg2[%c0_1, %c0_2] : memref<64x128xf32, #tpu.memory_space<vmem>>, vector<64x128xf32>
    %cst = arith.constant dense<0.000000e+00> : vector<2x128xf32>
    %2 = tpu.matmul %0, %1, %cst {dimension_numbers = #tpu.dot_dimension_numbers<[1], [0], [0], [1], [0, 0, 1, 1], [], []>} : vector<2x64xf32>, vector<64x128xf32>, vector<2x128xf32> -> vector<2x128xf32>
    %c0_3 = arith.constant 0 : index
    %c0_4 = arith.constant 0 : index
    %3 = vector.load %arg3[%c0_3, %c0_4] : memref<1x128xf32, #tpu.memory_space<vmem>>, vector<1x128xf32>
    %4 = vector.broadcast %3 : vector<1x128xf32> to vector<2x128xf32>
    %5 = arith.addf %2, %4 : vector<2x128xf32>
    %6 = math.tanh %5 : vector<2x128xf32>
    %c0_5 = arith.constant 0 : index
    %c0_6 = arith.constant 0 : index
    %7 = vector.load %arg4[%c0_5, %c0_6] : memref<128x128xf32, #tpu.memory_space<vmem>>, vector<128x128xf32>
    %cst_7 = arith.constant dense<0.000000e+00> : vector<2x128xf32>
    %8 = tpu.matmul %6, %7, %cst_7 {dimension_numbers = #tpu.dot_dimension_numbers<[1], [0], [0], [1], [0, 0, 1, 1], [], []>} : vector<2x128xf32>, vector<128x128xf32>, vector<2x128xf32> -> vector<2x128xf32>
    %c0_8 = arith.constant 0 : index
    %c0_9 = arith.constant 0 : index
    %9 = vector.load %arg5[%c0_8, %c0_9] : memref<1x128xf32, #tpu.memory_space<vmem>>, vector<1x128xf32>
    %10 = vector.broadcast %9 : vector<1x128xf32> to vector<2x128xf32>
    %11 = arith.addf %8, %10 : vector<2x128xf32>
    %12 = math.tanh %11 : vector<2x128xf32>
    %c0_10 = arith.constant 0 : index
    %c0_11 = arith.constant 0 : index
    %13 = vector.load %arg6[%c0_10, %c0_11] : memref<2x128xf32, #tpu.memory_space<vmem>>, vector<2x128xf32>
    tpu.vector_store %arg6[%c0_10, %c0_11], %12 {strides = array<i32>} : memref<2x128xf32, #tpu.memory_space<vmem>>, vector<2x128xf32>,
    return
  }
  func.func @transform_0(%arg0: i32) -> (i32, i32) {
    %c0_i32 = arith.constant 0 : i32
    %c0_i32_0 = arith.constant 0 : i32
    return %arg0, %c0_i32 : i32, i32
  }
  func.func @transform_1(%arg0: i32) -> (i32, i32) {
    %c0_i32 = arith.constant 0 : i32
    %c0_i32_0 = arith.constant 0 : i32
    %c0_i32_1 = arith.constant 0 : i32
    return %c0_i32, %c0_i32_0 : i32, i32
  }
  func.func @transform_2(%arg0: i32) -> (i32, i32) {
    %c0_i32 = arith.constant 0 : i32
    %c0_i32_0 = arith.constant 0 : i32
    %c0_i32_1 = arith.constant 0 : i32
    return %c0_i32, %c0_i32_0 : i32, i32
  }
  func.func @transform_3(%arg0: i32) -> (i32, i32) {
    %c0_i32 = arith.constant 0 : i32
    %c0_i32_0 = arith.constant 0 : i32
    %c0_i32_1 = arith.constant 0 : i32
    return %c0_i32, %c0_i32_0 : i32, i32
  }
  func.func @transform_4(%arg0: i32) -> (i32, i32) {
    %c0_i32 = arith.constant 0 : i32
    %c0_i32_0 = arith.constant 0 : i32
    %c0_i32_1 = arith.constant 0 : i32
    return %c0_i32, %c0_i32_0 : i32, i32
  }
  func.func @transform_5(%arg0: i32) -> (i32, i32) {
    %c0_i32 = arith.constant 0 : i32
    %c0_i32_0 = arith.constant 0 : i32
    return %arg0, %c0_i32 : i32, i32
  }
}

</mosaic_0001>

<bundles_post_ra>
// kernel: tpu_custom_call.1
= control target key start
LH: loop header
LB: loop body
LE: loop exit
PB: predicated region body
PF: predicated region fallthrough
CT: control target
= control target key end

     0   :  { %10 = vsyncpa [#allocation3], 0  ;;  %s599_s0 = inlined_call_operand.hbm [shape: f32[2,64], index: 0, kind: input, shape index: {}]   ;;  %s600_s1 = inlined_call_operand.hbm [shape: f32[64,128], index: 1, kind: input, shape index: {}]   ;;  %s601_s2 = inlined_call_operand.vmem [shape: f32[1,128], index: 2, kind: input, shape index: {}]   ;;  %s602_s3 = inlined_call_operand.hbm [shape: f32[128,128], index: 3, kind: input, shape index: {}]   ;;  %s603_s4 = inlined_call_operand.vmem [shape: f32[1,128], index: 4, kind: input, shape index: {}]   ;;  %s604_s5 = inlined_call_operand.hbm [shape: f32[2,128], index: 5, kind: output, shape index: {}]  }
   0x1   :  { %11 = vsyncpa [#allocation6], 0 }
   0x2   :  { %12 = vsyncpa [#allocation4], 0  ;;  %s488_s18 = smov [#allocation5]   ;;  %s394_s22 = scalar_lea.hbm %s600_s1, 1024 }
   0x3   :  { %s28_s19 = sshll.u32 %s488_s18, 4  ;;  %p395_p0 = scmp.ne.s32.totalorder %s600_s1, %s394_s22  ;;  %s29_s19 = int_to_ptr.vmem [resolvable:$true] %s28_s19 }
   0x4   :  { %p398_p1 = scmp.lt.u32.totalorder %s394_s22, %s600_s1 }
   0x6   :  { %p400_p2 = pnand %p398_p1, %p395_p0 }
   0x8   :  { %403 = shalt.err (!%p400_p2)
}
   0x9   :  { %s404_s27 = scalar_lea.vmem %s29_s19, 1024  ;;  %p409_p4 = scmp.lt.s32.totalorder %s29_s19, %s29_s19 }
   0xa   :  { %p405_p3 = scmp.ne.s32.totalorder %s29_s19, %s404_s27  ;;  %p410_p5 = scmp.lt.s32.totalorder %s404_s27, %s404_s27 }
   0xc   :  { %p411_p6 = por %p410_p5, %p409_p4 }
   0xe   :  { %p412_p7 = pnand %p411_p6, %p405_p3 }
  0x10   :  { %415 = shalt.err (!%p412_p7)
}
  0x11   :  { %s489_s28 = smov 128   ;;  %s490_s29 = smov 8  }
  0x12   :  { %34 = dma.hbm_to_vmem [thread:$0]  %s600_s1, 1024, %s29_s19, [#allocation6], %s489_s28, %s489_s28, %s490_s29  }
  0x13   :  { %s491_s7 = smov [#allocation2]   ;;  %s492_s9 = smov [#allocation7]  }
  0x14   :  { %s19_s8 = sshll.u32 %s491_s7, 4  ;;  %s42_s10 = sshll.u32 %s492_s9, 4  ;;  %s20_s8 = int_to_ptr.vmem [resolvable:$true] %s19_s8  ;;  %s43_s10 = int_to_ptr.vmem [resolvable:$true] %s42_s10 }
  0x15   :  { %s416_s13 = scalar_lea.hbm %s599_s0, 32 }
  0x16   :  { %p417_p8 = scmp.ne.s32.totalorder %s599_s0, %s416_s13  ;;  %p420_p9 = scmp.lt.u32.totalorder %s416_s13, %s599_s0 }
  0x18   :  { %p422_p10 = pnand %p420_p9, %p417_p8 }
  0x1a   :  { %425 = shalt.err (!%p422_p10)
}
  0x1b   :  { %s426_s1 = scalar_lea.vmem %s20_s8, 32  ;;  %p431_p12 = scmp.lt.s32.totalorder %s20_s8, %s20_s8 }
  0x1c   :  { %p427_p11 = scmp.ne.s32.totalorder %s20_s8, %s426_s1  ;;  %p432_p13 = scmp.lt.s32.totalorder %s426_s1, %s426_s1 }
  0x1e   :  { %p433_p0 = por %p432_p13, %p431_p12 }
  0x20   :  { %p434_p1 = pnand %p433_p0, %p427_p11 }
  0x22   :  { %437 = shalt.err (!%p434_p1)
}
  0x23   :  { %22 = dma.hbm_to_vmem [thread:$0]  %s599_s0, 32, %s20_s8, [#allocation3]  }
  0x24   :  { %s438_s22 = scalar_lea.hbm %s602_s3, 2048 }
  0x25   :  { %p439_p2 = scmp.ne.s32.totalorder %s602_s3, %s438_s22  ;;  %p442_p3 = scmp.lt.u32.totalorder %s438_s22, %s602_s3 }
  0x27   :  { %p444_p4 = pnand %p442_p3, %p439_p2 }
  0x29   :  { %447 = shalt.err (!%p444_p4)
}
  0x2a   :  { %s448_s27 = scalar_lea.vmem %s43_s10, 2048  ;;  %p453_p6 = scmp.lt.s32.totalorder %s43_s10, %s43_s10 }
  0x2b   :  { %p449_p5 = scmp.ne.s32.totalorder %s43_s10, %s448_s27  ;;  %p454_p7 = scmp.lt.s32.totalorder %s448_s27, %s448_s27 }
  0x2d   :  { %p455_p8 = por %p454_p7, %p453_p6 }
  0x2f   :  { %p456_p9 = pnand %p455_p8, %p449_p5 }
  0x31   :  { %459 = shalt.err (!%p456_p9)
}
  0x32   :  { %48 = dma.hbm_to_vmem [thread:$0]  %s602_s3, 2048, %s43_s10, [#allocation6], %s489_s28, %s489_s28, %s490_s29  }
  0x33   :  { %482 = dma.done.wait [#allocation3], 32  }
  0x34   :  { %483 = vsyncadd [#allocation3], 4294967264 }
  0x35   :  { %484 = dma.done.wait [#allocation6], 3072  }
  0x36   :  { %485 = vsyncadd [#allocation6], 4294964224  ;;  %v493_v0 = vmov 0.0|0.0   ;;  %vm494_vm0 = vmmov 0   ;;  %v495_v1 = vmov 0.0   ;;  %v61_v2 = vld [vmem:[#allocation5] sm:$0xff] }
  0x37   :  { %345 = vmatprep.subr.bf16.mxu0 %v493_v0  ;;  %307 = vmatprep.mubr.msk.f32.mxu0 %vm494_vm0, %v495_v1  ;;  %v62_v3 = vld [vmem:[#allocation5 + $0x8] sm:$0xff]  ;;  %v63_v4 = vld [vmem:[#allocation5 + $0x10] sm:$0xff]  ;;  %v64_v6 = vld [vmem:[#allocation5 + $0x18] sm:$0xff]  ;;  %vm76_vm1 = vcmask 523264   ;;  %s496_s7 = smov [#allocation8]  }
  0x38   :  { %357 = vmatprep.subr.bf16.mxu1 %v493_v0  ;;  %342 = vmatprep.mubr.msk.f32.mxu1 %vm494_vm0, %v495_v1  ;;  %v346_v5 = vpack.c.bf16 %v62_v3, %v61_v2  ;;  %v349_v7 = vpack.c.bf16 %v64_v6, %v63_v4  ;;  %v151_v8 = vld [vmem:[#allocation7] sm:$0xff]  ;;  %v152_v9 = vld [vmem:[#allocation7 + $0x8] sm:$0xff]  ;;  %v153_v10 = vld [vmem:[#allocation7 + $0x10] sm:$0xff]  ;;  %s252_s8 = sshll.u32 %s496_s7, 4  ;;  %s253_s8 = int_to_ptr.vmem [resolvable:$true] %s252_s8 }
  0x39   :  { %v65_v11 = vld [vmem:[#allocation5 + $0x20] sm:$0xff]  ;;  %v66_v12 = vld [vmem:[#allocation5 + $0x28] sm:$0xff]  ;;  %v358_v13 = vpack.c.bf16 %v152_v9, %v151_v8  ;;  %v154_v14 = vld [vmem:[#allocation7 + $0x18] sm:$0xff]  ;;  %p465_p11 = scmp.lt.s32.totalorder %s253_s8, %s253_s8 }
  0x3a   :  { %347 = vmatpush3.bf16.msra.mxu0 %v346_v5  ;;  %v361_v15 = vpack.c.bf16 %v154_v14, %v153_v10  ;;  %v352_v16 = vpack.c.bf16 %v66_v12, %v65_v11  ;;  %v155_v17 = vld [vmem:[#allocation7 + $0x20] sm:$0xff]  ;;  %v156_v18 = vld [vmem:[#allocation7 + $0x28] sm:$0xff]  ;;  %v67_v19 = vld [vmem:[#allocation5 + $0x30] sm:$0xff] }
  0x3b   :  { %348 = vmatprep.subr.bf16.mxu0 %v493_v0  ;;  %359 = vmatpush3.bf16.msra.mxu1 %v358_v13  ;;  %v68_v20 = vld [vmem:[#allocation5 + $0x38] sm:$0xff]  ;;  %v364_v21 = vpack.c.bf16 %v156_v18, %v155_v17  ;;  %v157_v23 = vld [vmem:[#allocation7 + $0x30] sm:$0xff]  ;;  %v159_v27 = vld [vmem:[#allocation7 + $0x40] sm:$0xff] }
  0x3c   :  { %360 = vmatprep.subr.bf16.mxu1 %v493_v0  ;;  %v355_v22 = vpack.c.bf16 %v68_v20, %v67_v19  ;;  %v158_v24 = vld [vmem:[#allocation7 + $0x38] sm:$0xff]  ;;  %v160_v28 = vld [vmem:[#allocation7 + $0x48] sm:$0xff]  ;;  %v161_v30 = vld [vmem:[#allocation7 + $0x50] sm:$0xff] }
  0x3d   :  { %v367_v25 = vpack.c.bf16 %v158_v24, %v157_v23  ;;  %v60_v26 = vld [vmem:[#allocation2] sm:$0x3]  ;;  %v370_v29 = vpack.c.bf16 %v160_v28, %v159_v27  ;;  %v163_v33 = vld [vmem:[#allocation7 + $0x60] sm:$0xff]  ;;  %v164_v34 = vld [vmem:[#allocation7 + $0x68] sm:$0xff] }
  0x3e   :  { %350 = vmatpush3.bf16.msra.mxu0 %v349_v7  ;;  %v162_v31 = vld [vmem:[#allocation7 + $0x58] sm:$0xff]  ;;  %v376_v35 = vpack.c.bf16 %v164_v34, %v163_v33  ;;  %v165_v36 = vld [vmem:[#allocation7 + $0x70] sm:$0xff] }
  0x3f   :  { %351 = vmatprep.subr.bf16.mxu0 %v493_v0  ;;  %362 = vmatpush3.bf16.msra.mxu1 %v361_v15  ;;  %v373_v32 = vpack.c.bf16 %v162_v31, %v161_v30  ;;  %v166_v37 = vld [vmem:[#allocation7 + $0x78] sm:$0xff] }
  0x40   :  { %363 = vmatprep.subr.bf16.mxu1 %v493_v0  ;;  %v379_v38 = vpack.c.bf16 %v166_v37, %v165_v36  ;;  %v262_v39 = vld [vmem:[%s601_s2] ss:$0 sm:$0xff]  ;;  %s460_s2 = scalar_lea.vmem %s253_s8, 32 }
  0x41   :  { %v264_v44 = vld [vmem:[%s603_s4] ss:$0 sm:$0xff]  ;;  %p461_p10 = scmp.ne.s32.totalorder %s253_s8, %s460_s2  ;;  %p466_p12 = scmp.lt.s32.totalorder %s460_s2, %s460_s2 }
  0x42   :  { %353 = vmatpush3.bf16.msra.mxu0 %v352_v16 }
  0x43   :  { %354 = vmatprep.subr.bf16.mxu0 %v493_v0  ;;  %365 = vmatpush3.bf16.msra.mxu1 %v364_v21  ;;  %p467_p13 = por %p466_p12, %p465_p11 }
  0x44   :  { %366 = vmatprep.subr.bf16.mxu1 %v493_v0 }
  0x45   :  { %p468_p0 = pnand %p467_p13, %p461_p10 }
  0x46   :  { %356 = vmatpush3.bf16.msra.mxu0 %v355_v22 }
  0x47   :  { %368 = vmatpush3.bf16.msra.mxu1 %v367_v25 }
  0x48   :  { %369 = vmatprep.subr.bf16.mxu1 %v493_v0 }
  0x49   :  { %308 = vmatmul.mubr.msk.f32.vlgmr.msra.gmra.mrb[0].mxu0 %vm76_vm1, %v60_v26 }
  0x4b   :  { %371 = vmatpush3.bf16.msra.mxu1 %v370_v29 }
  0x4c   :  { %372 = vmatprep.subr.bf16.mxu1 %v493_v0 }
  0x4f   :  { %374 = vmatpush3.bf16.msra.mxu1 %v373_v32 }
  0x50   :  { %375 = vmatprep.subr.bf16.mxu1 %v493_v0 }
  0x53   :  { %377 = vmatpush3.bf16.msra.mxu1 %v376_v35 }
  0x54   :  { %378 = vmatprep.subr.bf16.mxu1 %v493_v0 }
  0x57   :  { %380 = vmatpush3.bf16.msra.mxu1 %v379_v38 }
 0x11c   :  { %v146_v40 = vpop.f32.mrb[0].mxu0 }
 0x11d   :  { %v147_v41 = vadd.f32 %v262_v39, %v146_v40  ;;  %v309_v42 = vpop.f32.mrb[1].mxu0 }
 0x11f   :  { %390 = vtanh.f32 %v147_v41 }
 0x129   :  { %v391_v43 = vpop.eup %390 }
 0x12a   :  { %343 = vmatmul.mubr.f32.vlgmr.msra.gmra.mrb[0].mxu1 %v391_v43 }
 0x1fd   :  { %v240_v45 = vpop.f32.mrb[0].mxu1 }
 0x1fe   :  { %v241_v46 = vadd.f32 %v264_v44, %v240_v45  ;;  %v344_v47 = vpop.f32.mrb[1].mxu1 }
 0x200   :  { %392 = vtanh.f32 %v241_v46 }
 0x20a   :  { %v393_v48 = vpop.eup %392 }
 0x20b   :  { %245 = vst [vmem:[#allocation8] sm:$0x3] %v393_v48 }
 0x20c   :  { %471 = shalt.err (!%p468_p0)
}
 0x20d   :  { %s472_s4 = scalar_lea.hbm %s604_s5, 32 }
 0x20e   :  { %p473_p1 = scmp.ne.s32.totalorder %s604_s5, %s472_s4  ;;  %p476_p2 = scmp.lt.u32.totalorder %s472_s4, %s604_s5 }
 0x210   :  { %p478_p3 = pnand %p476_p2, %p473_p1 }
 0x212   :  { %481 = shalt.err (!%p478_p3)
}
 0x213   :  { %255 = dma.vmem_to_hbm [thread:$0]  %s253_s8, 32, %s604_s5, [#allocation4]  }
 0x214   :  { %486 = dma.done.wait [#allocation4], 32  }
 0x215   :  { %487 = vsyncadd [#allocation4], 4294967264 }
 0x216   :  { %259 = vsyncpa [#allocation3], 1 }
 0x217   :  { %260 = vsyncpa [#allocation6], 1 }
 0x218   :  { %261 = vsyncpa [#allocation4], 1 }

</bundles_post_ra>
